<compile_context>
chip_gen: v5e
topology: v5e:2x2
jax: 0.10.0
libtpu: 0.0.40
codegen_flags: <defaults>
</compile_context>

<pallas_src>
import functools
import math

import jax
import jax.numpy as jnp
from jax.experimental import pallas as pl
from jax.experimental.pallas import tpu as pltpu


def _rb_kernel(x_ref, t_ref, b_ref, out_ref, *, H):
    # x_ref  : (B2*H, L)    f32 packed input slab, L = lane_pack * W * C
    # t_ref  : (2, 3*L, L)  K-concatenated block-Toeplitz weights (conv01, conv02)
    # b_ref  : (2, 1, L)    lane-packed conv biases (f32)
    # out_ref: (B2*H, L)    f32
    rows, L = x_ref.shape
    x = x_ref[...]

    # Row masks for zero padding in H at every stacked batch-group boundary.
    row = jax.lax.broadcasted_iota(jnp.int32, (rows, L), 0) % H
    is_top = row == 0
    is_bot = row == H - 1

    def conv3x3(v, t, b):
        # v[r] holds a packed (lane_pack, W, C) image row.  dy shifts are
        # sublane rolls with the wrapped rows masked to zero; dx shifts and
        # width padding are folded into the block-Toeplitz weight; the three
        # dy taps are fused into a single K = 3*L matmul.
        v_up = jnp.where(is_top, 0.0, pltpu.roll(v, shift=1, axis=0))         # v[r-1]
        v_dn = jnp.where(is_bot, 0.0, pltpu.roll(v, shift=rows - 1, axis=0))  # v[r+1]
        k = jnp.concatenate([v_up, v, v_dn], axis=1).astype(t.dtype)
        return jnp.dot(k, t, preferred_element_type=jnp.float32) + b

    h1 = jnp.maximum(conv3x3(x, t_ref[0], b_ref[0]), 0.0)    # conv01 + bias + ReLU
    h2 = conv3x3(h1, t_ref[1], b_ref[1])                     # conv02 + bias
    out_ref[...] = (h2 + x).astype(out_ref.dtype)            # residual add (f32)


def _toeplitz_dy(w_dy, width):
    """(3, Cin, Cout) taps for one dy -> (width*Cin, width*Cout) block-Toeplitz.

    T[wi*Cin+ci, wo*Cout+co] = w_dy[wi-wo+1, ci, co] for |wi-wo| <= 1, so
    `packed_row @ T` realizes the width part (incl. SAME zero padding) of a
    stride-1 3x3 convolution on the (W, C)-packed lane layout.
    """
    _, cin, cout = w_dy.shape
    t = jnp.zeros((width * cin, width * cout), w_dy.dtype)
    for dx in range(3):
        t = t + jnp.kron(jnp.eye(width, k=1 - dx, dtype=w_dy.dtype), w_dy[dx])
    return t


def rb_prepare_weights(w1, w2, width, lane_pack, matmul_dtype=jnp.bfloat16):
    """Stack conv01/conv02 (3,3,C,C) HWIO weights into one (2, 3*L, L) tensor.

    Per dy: block-Toeplitz over width and block-diagonal over lane_pack (the
    batch elements packed along the lane axis); the three dy matrices are
    concatenated along K so each conv becomes a single matmul.  Constant across
    forward passes -- compute once and cache.
    """
    eye_lp = jnp.eye(lane_pack, dtype=w1.dtype)

    def build(w):
        mats = [jnp.kron(eye_lp, _toeplitz_dy(w[dy], width)) for dy in range(3)]
        return jnp.concatenate(mats, axis=0)              # (3*L, L)

    return jnp.stack([build(w1), build(w2)]).astype(matmul_dtype)


def rb_prepare_bias(b1, b2, width, lane_pack):
    """(C,) conv biases -> (2, 1, lane_pack*width*C) lane-packed f32 slabs."""
    reps = lane_pack * width
    return jnp.stack([jnp.tile(b1, reps), jnp.tile(b2, reps)])[:, None, :]


@jax.jit
def rb_forward(x_nhwc, t_stacked, b_stacked):
    """x_nhwc: (B, H, W, C) f32. t/b from rb_prepare_*. Returns (B, H, W, C)."""
    B, H, W, C = x_nhwc.shape
    WC = W * C
    L = t_stacked.shape[-1]
    lane_pack = L // WC
    B2 = B // lane_pack
    rows = B2 * H

    # (B,H,W,C) -> (B2, lane_pack, H, WC) -> (B2, H, lane_pack, WC) -> (rows, L)
    xp = (x_nhwc.reshape(B2, lane_pack, H, WC)
          .transpose(0, 2, 1, 3)
          .reshape(rows, L))

    out = pl.pallas_call(
        functools.partial(_rb_kernel, H=H),
        out_shape=jax.ShapeDtypeStruct((rows, L), x_nhwc.dtype),
        grid_spec=pltpu.PrefetchScalarGridSpec(
            num_scalar_prefetch=0,
            grid=(1,),                                   # whole block in one step
            in_specs=[
                pl.BlockSpec((rows, L), lambda i: (0, 0)),
                pl.BlockSpec(t_stacked.shape, lambda i: (0, 0, 0)),
                pl.BlockSpec(b_stacked.shape, lambda i: (0, 0, 0)),
            ],
            out_specs=pl.BlockSpec((rows, L), lambda i: (0, 0)),
        ),
        compiler_params=pltpu.CompilerParams(
            dimension_semantics=("arbitrary",),
        ),
    )(xp, t_stacked, b_stacked)

    return (out.reshape(B2, H, lane_pack, W, C)
            .transpose(0, 2, 1, 3, 4)
            .reshape(B, H, W, C))


def rb_reference(x_nhwc, w1, b1, w2, b2):
    """Pure-JAX reference (same math as the PyTorch residual conv block)."""
    dn = jax.lax.conv_dimension_numbers(
        x_nhwc.shape, w1.shape, ("NHWC", "HWIO", "NHWC"))
    h = jax.lax.conv_general_dilated(
        x_nhwc, w1, window_strides=(1, 1), padding="SAME",
        dimension_numbers=dn) + b1
    h = jnp.maximum(h, 0.0)
    h = jax.lax.conv_general_dilated(
        h, w2, window_strides=(1, 1), padding="SAME",
        dimension_numbers=dn) + b2
    return h + x_nhwc


if __name__ == "__main__":
    key = jax.random.PRNGKey(0)
    k_x, k_w1, k_w2, k_b1, k_b2 = jax.random.split(key, 5)

    # Small shapes consistent with the module: residual block on NCHW input.
    B, C, H, W = 2, 4, 16, 16
    x_nchw = jax.random.normal(k_x, (B, C, H, W), jnp.float32)

    # Deterministic kaiming-style init for the two biased 3x3 convs (HWIO).
    fan_in = C * 3 * 3
    scale = (2.0 / fan_in) ** 0.5
    w1 = jax.random.normal(k_w1, (3, 3, C, C), jnp.float32) * scale
    w2 = jax.random.normal(k_w2, (3, 3, C, C), jnp.float32) * scale
    b1 = jax.random.normal(k_b1, (C,), jnp.float32) * 0.1
    b2 = jax.random.normal(k_b2, (C,), jnp.float32) * 0.1

    # NCHW (PyTorch) -> NHWC (kernel layout).
    x_nhwc = jnp.transpose(x_nchw, (0, 2, 3, 1))

    # Pack pairs of batch elements along lanes so the slab is 128 lanes wide.
    lane_pack = math.gcd(B, max(1, 128 // (W * C)))

    ref = rb_reference(x_nhwc, w1, b1, w2, b2)
    b_packed = rb_prepare_bias(b1, b2, W, lane_pack)

    # Perf path: bf16 matmul operands (native MXU rate on v6e/v7x).
    t_bf16 = rb_prepare_weights(w1, w2, W, lane_pack, jnp.bfloat16)
    out = jax.block_until_ready(rb_forward(x_nhwc, t_bf16, b_packed))
    assert jnp.allclose(out, ref, atol=1e-1, rtol=5e-2), "bf16 Pallas RB != reference"

    # Tight numerical check of the same kernel with f32 matmul operands.
    t_f32 = rb_prepare_weights(w1, w2, W, lane_pack, jnp.float32)
    out_f32 = jax.block_until_ready(rb_forward(x_nhwc, t_f32, b_packed))
    assert jnp.allclose(out_f32, ref, atol=2e-4, rtol=2e-4), "f32 Pallas RB != reference"

    # NHWC -> NCHW to match the PyTorch module's output convention.
    out_nchw = jnp.transpose(out, (0, 3, 1, 2))
    assert out_nchw.shape == (B, C, H, W)

    print("KERNEL_OK")
</pallas_src>

<mosaic_0001>
module attributes {stable_mosaic.version = 11 : i64} {
  func.func @_rb_kernel(%arg0: i32, %arg1: memref<16x128xf32, #tpu.memory_space<vmem>>, %arg2: memref<2x384x128xbf16, #tpu.memory_space<vmem>>, %arg3: memref<2x1x128xf32, #tpu.memory_space<vmem>>, %arg4: memref<16x128xf32, #tpu.memory_space<vmem>>) attributes {dimension_semantics = [#tpu.dimension_semantics<arbitrary>], iteration_bounds = array<i64: 1>, scalar_prefetch = 0 : i64, scratch_operands = 0 : i64, tpu.core_type = #tpu.core_type<tc>, window_params = [{pipeline_mode = #tpu.pipeline_mode<synchronous>, transform_indices = @transform_0, window_bounds = array<i64: 16, 128>}, {pipeline_mode = #tpu.pipeline_mode<synchronous>, transform_indices = @transform_1, window_bounds = array<i64: 2, 384, 128>}, {pipeline_mode = #tpu.pipeline_mode<synchronous>, transform_indices = @transform_2, window_bounds = array<i64: 2, 1, 128>}, {pipeline_mode = #tpu.pipeline_mode<synchronous>, transform_indices = @transform_3, window_bounds = array<i64: 16, 128>}]} {
    %c0 = arith.constant 0 : index
    %c0_0 = arith.constant 0 : index
    %0 = vector.load %arg1[%c0, %c0_0] : memref<16x128xf32, #tpu.memory_space<vmem>>, vector<16x128xf32>
    %1 = tpu.iota {dimensions = array<i32: 0>} : vector<16x128xi32>
    %c16_i32 = arith.constant 16 : i32
    %c0_i32 = arith.constant 0 : i32
    %2 = arith.cmpi eq, %c16_i32, %c0_i32 : i32
    %c1_i32 = arith.constant 1 : i32
    %3 = arith.select %2, %c1_i32, %c16_i32 : i32
    %4 = vector.broadcast %3 : i32 to vector<16x128xi32>
    %5 = arith.remsi %1, %4 : vector<16x128xi32>
    %c0_i32_1 = arith.constant 0 : i32
    %6 = vector.broadcast %c0_i32_1 : i32 to vector<16x128xi32>
    %7 = arith.cmpi ne, %5, %6 : vector<16x128xi32>
    %c0_i32_2 = arith.constant 0 : i32
    %8 = vector.broadcast %c0_i32_2 : i32 to vector<16x128xi32>
    %9 = arith.cmpi slt, %5, %8 : vector<16x128xi32>
    %c0_i32_3 = arith.constant 0 : i32
    %10 = arith.cmpi slt, %3, %c0_i32_3 : i32
    %11 = vector.broadcast %10 : i1 to vector<16x128xi1>
    %12 = vector.broadcast %11 : vector<16x128xi1> to vector<16x128xi1>
    %13 = arith.xori %9, %12 : vector<16x128xi1>
    %14 = arith.andi %13, %7 : vector<16x128xi1>
    %15 = vector.broadcast %3 : i32 to vector<16x128xi32>
    %16 = arith.addi %5, %15 : vector<16x128xi32>
    %17 = arith.select %14, %16, %5 : vector<16x128xi1>, vector<16x128xi32>
    %c0_i32_4 = arith.constant 0 : i32
    %18 = vector.broadcast %c0_i32_4 : i32 to vector<16x128xi32>
    %19 = arith.cmpi eq, %17, %18 : vector<16x128xi32>
    %c15_i32 = arith.constant 15 : i32
    %20 = vector.broadcast %c15_i32 : i32 to vector<16x128xi32>
    %21 = arith.cmpi eq, %17, %20 : vector<16x128xi32>
    %c0_5 = arith.constant 0 : index
    %c0_6 = arith.constant 0 : index
    %c0_7 = arith.constant 0 : index
    %22 = vector.load %arg2[%c0_5, %c0_6, %c0_7] : memref<2x384x128xbf16, #tpu.memory_space<vmem>>, vector<1x384x128xbf16>
    %23 = vector.shape_cast %22 : vector<1x384x128xbf16> to vector<384x128xbf16>
    %c0_8 = arith.constant 0 : index
    %c0_9 = arith.constant 0 : index
    %c0_10 = arith.constant 0 : index
    %24 = vector.load %arg3[%c0_8, %c0_9, %c0_10] : memref<2x1x128xf32, #tpu.memory_space<vmem>>, vector<1x1x128xf32>
    %25 = vector.shape_cast %24 : vector<1x1x128xf32> to vector<1x128xf32>
    %c1_i32_11 = arith.constant 1 : i32
    %26 = tpu.dynamic_rotate %0 by %c1_i32_11 dim 0 : vector<16x128xf32>, i32 -> vector<16x128xf32>
    %cst = arith.constant 0.000000e+00 : f32
    %27 = vector.broadcast %cst : f32 to vector<16x128xf32>
    %28 = arith.select %19, %27, %26 : vector<16x128xi1>, vector<16x128xf32>
    %c15_i32_12 = arith.constant 15 : i32
    %29 = tpu.dynamic_rotate %0 by %c15_i32_12 dim 0 : vector<16x128xf32>, i32 -> vector<16x128xf32>
    %cst_13 = arith.constant 0.000000e+00 : f32
    %30 = vector.broadcast %cst_13 : f32 to vector<16x128xf32>
    %31 = arith.select %21, %30, %29 : vector<16x128xi1>, vector<16x128xf32>
    %32 = tpu.concatenate %28, %0, %31 in 1 : vector<16x128xf32>, vector<16x128xf32>, vector<16x128xf32> -> vector<16x384xf32>
    %33 = arith.truncf %32 : vector<16x384xf32> to vector<16x384xbf16>
    %cst_14 = arith.constant dense<0.000000e+00> : vector<16x128xf32>
    %34 = tpu.matmul %33, %23, %cst_14 {dimension_numbers = #tpu.dot_dimension_numbers<[1], [0], [0], [1], [0, 0, 1, 1], [], []>} : vector<16x384xbf16>, vector<384x128xbf16>, vector<16x128xf32> -> vector<16x128xf32>
    %35 = vector.broadcast %25 : vector<1x128xf32> to vector<16x128xf32>
    %36 = arith.addf %34, %35 : vector<16x128xf32>
    %cst_15 = arith.constant 0.000000e+00 : f32
    %37 = vector.broadcast %cst_15 : f32 to vector<16x128xf32>
    %38 = arith.maximumf %36, %37 : vector<16x128xf32>
    %c1 = arith.constant 1 : index
    %c0_16 = arith.constant 0 : index
    %c0_17 = arith.constant 0 : index
    %39 = vector.load %arg2[%c1, %c0_16, %c0_17] : memref<2x384x128xbf16, #tpu.memory_space<vmem>>, vector<1x384x128xbf16>
    %40 = vector.shape_cast %39 : vector<1x384x128xbf16> to vector<384x128xbf16>
    %c1_18 = arith.constant 1 : index
    %c0_19 = arith.constant 0 : index
    %c0_20 = arith.constant 0 : index
    %41 = vector.load %arg3[%c1_18, %c0_19, %c0_20] : memref<2x1x128xf32, #tpu.memory_space<vmem>>, vector<1x1x128xf32>
    %42 = vector.shape_cast %41 : vector<1x1x128xf32> to vector<1x128xf32>
    %c1_i32_21 = arith.constant 1 : i32
    %43 = tpu.dynamic_rotate %38 by %c1_i32_21 dim 0 : vector<16x128xf32>, i32 -> vector<16x128xf32>
    %cst_22 = arith.constant 0.000000e+00 : f32
    %44 = vector.broadcast %cst_22 : f32 to vector<16x128xf32>
    %45 = arith.select %19, %44, %43 : vector<16x128xi1>, vector<16x128xf32>
    %c15_i32_23 = arith.constant 15 : i32
    %46 = tpu.dynamic_rotate %38 by %c15_i32_23 dim 0 : vector<16x128xf32>, i32 -> vector<16x128xf32>
    %cst_24 = arith.constant 0.000000e+00 : f32
    %47 = vector.broadcast %cst_24 : f32 to vector<16x128xf32>
    %48 = arith.select %21, %47, %46 : vector<16x128xi1>, vector<16x128xf32>
    %49 = tpu.concatenate %45, %38, %48 in 1 : vector<16x128xf32>, vector<16x128xf32>, vector<16x128xf32> -> vector<16x384xf32>
    %50 = arith.truncf %49 : vector<16x384xf32> to vector<16x384xbf16>
    %cst_25 = arith.constant dense<0.000000e+00> : vector<16x128xf32>
    %51 = tpu.matmul %50, %40, %cst_25 {dimension_numbers = #tpu.dot_dimension_numbers<[1], [0], [0], [1], [0, 0, 1, 1], [], []>} : vector<16x384xbf16>, vector<384x128xbf16>, vector<16x128xf32> -> vector<16x128xf32>
    %52 = vector.broadcast %42 : vector<1x128xf32> to vector<16x128xf32>
    %53 = arith.addf %51, %52 : vector<16x128xf32>
    %54 = arith.addf %53, %0 : vector<16x128xf32>
    %c0_26 = arith.constant 0 : index
    %c0_27 = arith.constant 0 : index
    %55 = vector.load %arg4[%c0_26, %c0_27] : memref<16x128xf32, #tpu.memory_space<vmem>>, vector<16x128xf32>
    tpu.vector_store %arg4[%c0_26, %c0_27], %54 {strides = array<i32>} : memref<16x128xf32, #tpu.memory_space<vmem>>, vector<16x128xf32>,
    return
  }
  func.func @transform_0(%arg0: i32) -> (i32, i32) {
    %c0_i32 = arith.constant 0 : i32
    %c0_i32_0 = arith.constant 0 : i32
    %c0_i32_1 = arith.constant 0 : i32
    return %c0_i32, %c0_i32_0 : i32, i32
  }
  func.func @transform_1(%arg0: i32) -> (i32, i32, i32) {
    %c0_i32 = arith.constant 0 : i32
    %c0_i32_0 = arith.constant 0 : i32
    %c0_i32_1 = arith.constant 0 : i32
    %c0_i32_2 = arith.constant 0 : i32
    return %c0_i32, %c0_i32_0, %c0_i32_1 : i32, i32, i32
  }
  func.func @transform_2(%arg0: i32) -> (i32, i32, i32) {
    %c0_i32 = arith.constant 0 : i32
    %c0_i32_0 = arith.constant 0 : i32
    %c0_i32_1 = arith.constant 0 : i32
    %c0_i32_2 = arith.constant 0 : i32
    return %c0_i32, %c0_i32_0, %c0_i32_1 : i32, i32, i32
  }
  func.func @transform_3(%arg0: i32) -> (i32, i32) {
    %c0_i32 = arith.constant 0 : i32
    %c0_i32_0 = arith.constant 0 : i32
    %c0_i32_1 = arith.constant 0 : i32
    return %c0_i32, %c0_i32_0 : i32, i32
  }
}

</mosaic_0001>

<bundles_post_ra>
// kernel: rb_forward.1
= control target key start
LH: loop header
LB: loop body
LE: loop exit
PB: predicated region body
PF: predicated region fallthrough
CT: control target
= control target key end

     0   :  { %v16_v14 = vlaneseq  ;;  %vm877_vm4 = vmmov 1   ;;  %s1110_s1 = inlined_call_operand.vmem [shape: bf16[2,384,128], index: 1, kind: input, shape index: {}]   ;;  %s1111_s2 = inlined_call_operand.vmem [shape: f32[2,1,128], index: 2, kind: input, shape index: {}]   ;;  %s1112_s0 = inlined_call_operand.vmem [shape: f32[16,128], index: 0, kind: input, shape index: {}]   ;;  %s1113_s3 = inlined_call_operand.vmem [shape: f32[16,128], index: 3, kind: output, shape index: {}]  }
   0x1   :  { %v831_v0 = vld [vmem:[%s1110_s1 + $0x38] sm:$0xff]  ;;  %v830_v3 = vld [vmem:[%s1110_s1 + $0x30] sm:$0xff]  ;;  %v829_v6 = vld [vmem:[%s1110_s1 + $0x28] sm:$0xff] }
   0x2   :  { %v839_v1 = vld [vmem:[%s1110_s1 + $0x78] sm:$0xff]  ;;  %260 = vmatpush.bf16.msra.mxu0 %v831_v0  ;;  %v838_v4 = vld [vmem:[%s1110_s1 + $0x70] sm:$0xff]  ;;  %v837_v7 = vld [vmem:[%s1110_s1 + $0x68] sm:$0xff]  ;;  %v949_v18 = vshrl.u32 %v16_v14, 7 }
   0x3   :  { %v847_v2 = vld [vmem:[%s1110_s1 + $0xb8] sm:$0xff]  ;;  %274 = vmatpush.bf16.msra.mxu1 %v839_v1  ;;  %v846_v5 = vld [vmem:[%s1110_s1 + $0xb0] sm:$0xff]  ;;  %v845_v8 = vld [vmem:[%s1110_s1 + $0xa8] sm:$0xff] }
   0x4   :  { %288 = vmatpush.bf16.msra.mxu2 %v847_v2  ;;  %v855_v9 = vld [vmem:[%s1110_s1 + $0xf8] sm:$0xff]  ;;  %v828_v10 = vld [vmem:[%s1110_s1 + $0x20] sm:$0xff]  ;;  %v854_v13 = vld [vmem:[%s1110_s1 + $0xf0] sm:$0xff]  ;;  %v18_v24 = vadd.s32 8, %v949_v18  ;;  %v23_v30 = vand.u32 15, %v949_v18  ;;  %vm98_vm0 = vcmp.lt.s32.totalorder %v949_v18, 1 }
   0x5   :  { %v836_v11 = vld [vmem:[%s1110_s1 + $0x60] sm:$0xff]  ;;  %517 = vmatpush.bf16.msra.mxu3 %v855_v9  ;;  %v827_v15 = vld [vmem:[%s1110_s1 + $0x18] sm:$0xff]  ;;  %v826_v19 = vld [vmem:[%s1110_s1 + $0x10] sm:$0xff]  ;;  %vm105_vm1 = vcmp.lt.s32.totalorder %v949_v18, 7 }
   0x6   :  { %261 = vmatpush.bf16.msra.mxu0 %v830_v3  ;;  %v844_v12 = vld [vmem:[%s1110_s1 + $0xa0] sm:$0xff]  ;;  %v835_v16 = vld [vmem:[%s1110_s1 + $0x58] sm:$0xff]  ;;  %v834_v20 = vld [vmem:[%s1110_s1 + $0x50] sm:$0xff]  ;;  %v30_v33 = vand.u32 15, %v18_v24  ;;  %vm872_vm2 = vcmp.ne.s32.totalorder %v23_v30, 0 }
   0x7   :  { %275 = vmatpush.bf16.msra.mxu1 %v838_v4  ;;  %v843_v17 = vld [vmem:[%s1110_s1 + $0x98] sm:$0xff]  ;;  %v842_v21 = vld [vmem:[%s1110_s1 + $0x90] sm:$0xff]  ;;  %v963_v22 = vld [vmem:[%s1112_s0] sm:$0xff] }
   0x8   :  { %289 = vmatpush.bf16.msra.mxu2 %v846_v5  ;;  %v968_v23 = vld [vmem:[%s1112_s0 + $0x8] sm:$0xff]  ;;  %v96_v27 = vrot.slane %v963_v22, 7  ;;  %v103_v31 = vrot.slane %v963_v22, 1  ;;  %v824_v34 = vld [vmem:[%s1110_s1] sm:$0xff]  ;;  %v863_v41 = vld [vmem:[%s1110_s1 + $0x138] sm:$0xff]  ;;  %vm873_vm3 = vcmp.ne.s32.totalorder %v30_v33, 15 }
   0x9   :  { %518 = vmatpush.bf16.msra.mxu3 %v854_v13  ;;  %v825_v25 = vld [vmem:[%s1110_s1 + $0x8] sm:$0xff]  ;;  %v97_v28 = vrot.slane %v968_v23, 7  ;;  %v104_v32 = vrot.slane %v968_v23, 1  ;;  %v832_v35 = vld [vmem:[%s1110_s1 + $0x40] sm:$0xff]  ;;  %v871_v42 = vld [vmem:[%s1110_s1 + $0x178] sm:$0xff]  ;;  %v111_v44 = vpack.c.bf16 %v968_v23, %v963_v22 }
   0xa   :  { %262 = vmatpush.bf16.msra.mxu0 %v829_v6  ;;  %v833_v26 = vld [vmem:[%s1110_s1 + $0x48] sm:$0xff]  ;;  %v840_v38 = vld [vmem:[%s1110_s1 + $0x80] sm:$0xff]  ;;  %vm1012_vm5 = vmpackc.low %vm877_vm4, %vm872_vm2 }
   0xb   :  { %276 = vmatpush.bf16.msra.mxu1 %v837_v7  ;;  %v841_v29 = vld [vmem:[%s1110_s1 + $0x88] sm:$0xff]  ;;  %v99_v36 = vsel %vm98_vm0, %v96_v27, %v97_v28  ;;  %v100_v37 = vsel %vm98_vm0, %v97_v28, %v96_v27  ;;  %v106_v39 = vsel %vm105_vm1, %v103_v31, %v104_v32  ;;  %v107_v40 = vsel %vm105_vm1, %v104_v32, %v103_v31  ;;  %vm1016_vm6 = vmpackc.low %vm873_vm3, %vm877_vm4  ;;  %v862_v48 = vld [vmem:[%s1110_s1 + $0x130] sm:$0xff] }
   0xc   :  { %290 = vmatpush.bf16.msra.mxu2 %v845_v8  ;;  %v665_v43 = vpack.c.bf16 %v99_v36, %v100_v37  ;;  %v669_v46 = vpack.c.bf16 %v107_v40, %v106_v39  ;;  %v870_v49 = vld [vmem:[%s1110_s1 + $0x170] sm:$0xff]  ;;  %v861_v50 = vld [vmem:[%s1110_s1 + $0x128] sm:$0xff]  ;;  %v860_v53 = vld [vmem:[%s1110_s1 + $0x120] sm:$0xff] }
   0xd   :  { %v853_v51 = vld [vmem:[%s1110_s1 + $0xe8] sm:$0xff]  ;;  %v852_v54 = vld [vmem:[%s1110_s1 + $0xe0] sm:$0xff]  ;;  %v859_v56 = vld [vmem:[%s1110_s1 + $0x118] sm:$0xff] }
   0xe   :  { %263 = vmatpush.bf16.msra.mxu0 %v828_v10  ;;  %v869_v52 = vld [vmem:[%s1110_s1 + $0x168] sm:$0xff]  ;;  %519 = vmatpush.bf16.msra.mxu3 %v853_v51  ;;  %v868_v55 = vld [vmem:[%s1110_s1 + $0x160] sm:$0xff]  ;;  %v851_v57 = vld [vmem:[%s1110_s1 + $0xd8] sm:$0xff] }
   0xf   :  { %277 = vmatpush.bf16.msra.mxu1 %v836_v11  ;;  %v867_v58 = vld [vmem:[%s1110_s1 + $0x158] sm:$0xff]  ;;  %v858_v59 = vld [vmem:[%s1110_s1 + $0x110] sm:$0xff]  ;;  %v857_v62 = vld [vmem:[%s1110_s1 + $0x108] sm:$0xff] }
  0x10   :  { %291 = vmatpush.bf16.msra.mxu2 %v844_v12  ;;  %v850_v60 = vld [vmem:[%s1110_s1 + $0xd0] sm:$0xff]  ;;  %v849_v63 = vld [vmem:[%s1110_s1 + $0xc8] sm:$0xff]  ;;  %v856_v1 = vld [vmem:[%s1110_s1 + $0x100] sm:$0xff] }
  0x11   :  { %v866_v61 = vld [vmem:[%s1110_s1 + $0x150] sm:$0xff]  ;;  %v865_v0 = vld [vmem:[%s1110_s1 + $0x148] sm:$0xff]  ;;  %v848_v2 = vld [vmem:[%s1110_s1 + $0xc0] sm:$0xff] }
  0x12   :  { %264 = vmatpush.bf16.msra.mxu0 %v827_v15  ;;  %520 = vmatpush.bf16.msra.mxu3 %v852_v54  ;;  %v864_v3 = vld [vmem:[%s1110_s1 + $0x140] sm:$0xff] }
  0x13   :  { %278 = vmatpush.bf16.msra.mxu1 %v835_v16  ;;  %v875_v4 = vld [vmem:[%s1111_s2] ss:$0 sm:$0xff]  ;;  %v876_v33 = vld [vmem:[%s1111_s2 + $0x1] ss:$0 sm:$0xff] }
  0x14   :  { %292 = vmatpush.bf16.msra.mxu2 %v843_v17 }
  0x16   :  { %265 = vmatpush.bf16.msra.mxu0 %v826_v19  ;;  %521 = vmatpush.bf16.msra.mxu3 %v851_v57 }
  0x17   :  { %279 = vmatpush.bf16.msra.mxu1 %v834_v20 }
  0x18   :  { %293 = vmatpush.bf16.msra.mxu2 %v842_v21 }
  0x1a   :  { %266 = vmatpush.bf16.msra.mxu0 %v825_v25  ;;  %522 = vmatpush.bf16.msra.mxu3 %v850_v60 }
  0x1b   :  { %280 = vmatpush.bf16.msra.mxu1 %v833_v26 }
  0x1c   :  { %294 = vmatpush.bf16.msra.mxu2 %v841_v29 }
  0x1e   :  { %267 = vmatpush.bf16.msra.mxu0 %v824_v34  ;;  %523 = vmatpush.bf16.msra.mxu3 %v849_v63 }
  0x1f   :  { %281 = vmatpush.bf16.msra.mxu1 %v832_v35 }
  0x20   :  { %295 = vmatpush.bf16.msra.mxu2 %v840_v38 }
  0x21   :  { %666 = vmatmul.msk.bf16.vlgmr.msra.gmra.mxu0 %vm1012_vm5, %v665_v43 }
  0x22   :  { %531 = vmatpush.bf16.msrb.mxu0 %v863_v41  ;;  %282 = vmatmul.bf16.vlgmr.msra.gmra.mxu1 %v111_v44 }
  0x23   :  { %545 = vmatpush.bf16.msrb.mxu1 %v871_v42  ;;  %670 = vmatmul.msk.bf16.vlgmr.msra.gmra.mxu2 %vm1016_vm6, %v669_v46 }
  0x24   :  { %524 = vmatpush.bf16.msra.mxu3 %v848_v2 }
  0x26   :  { %532 = vmatpush.bf16.msrb.mxu0 %v862_v48 }
  0x27   :  { %546 = vmatpush.bf16.msrb.mxu1 %v870_v49 }
  0x2a   :  { %533 = vmatpush.bf16.msrb.mxu0 %v861_v50 }
  0x2b   :  { %547 = vmatpush.bf16.msrb.mxu1 %v869_v52 }
  0x2e   :  { %534 = vmatpush.bf16.msrb.mxu0 %v860_v53 }
  0x2f   :  { %548 = vmatpush.bf16.msrb.mxu1 %v868_v55 }
  0x32   :  { %535 = vmatpush.bf16.msrb.mxu0 %v859_v56 }
  0x33   :  { %549 = vmatpush.bf16.msrb.mxu1 %v867_v58 }
  0x36   :  { %536 = vmatpush.bf16.msrb.mxu0 %v858_v59 }
  0x37   :  { %550 = vmatpush.bf16.msrb.mxu1 %v866_v61 }
  0x3a   :  { %537 = vmatpush.bf16.msrb.mxu0 %v857_v62 }
  0x3b   :  { %551 = vmatpush.bf16.msrb.mxu1 %v865_v0 }
  0x3e   :  { %538 = vmatpush.bf16.msrb.mxu0 %v856_v1 }
  0x3f   :  { %552 = vmatpush.bf16.msrb.mxu1 %v864_v3 }
  0x9e   :  { %v269_v5 = vpop.f32.mrf.mxu0 }
  0x9f   :  { %v270_v6 = vadd.f32 %v875_v4, %v269_v5  ;;  %v283_v7 = vpop.f32.mrf.mxu1 }
  0xa1   :  { %v284_v8 = vadd.f32 %v283_v7, %v270_v6 }
  0xa6   :  { %v297_v9 = vpop.f32.mrf.mxu2  ;;  %v271_v10 = vpop.f32.mrf.mxu0 }
  0xa7   :  { %v272_v11 = vadd.f32 %v875_v4, %v271_v10  ;;  %v298_v12 = vadd.f32 %v297_v9, %v284_v8  ;;  %v285_v13 = vpop.f32.mrf.mxu1 }
  0xa9   :  { %v286_v14 = vadd.f32 %v285_v13, %v272_v11  ;;  %v302_v15 = vmax.f32 %v298_v12, 0.0 }
  0xab   :  { %v355_v20 = vrot.slane %v302_v15, 7  ;;  %v361_v21 = vrot.slane %v302_v15, 1 }
  0xae   :  { %v299_v16 = vpop.f32.mrf.mxu2 }
  0xaf   :  { %v300_v17 = vadd.f32 %v299_v16, %v286_v14 }
  0xb1   :  { %v303_v19 = vmax.f32 %v300_v17, 0.0 }
  0xb3   :  { %v356_v24 = vrot.slane %v303_v19, 7  ;;  %v362_v25 = vrot.slane %v303_v19, 1  ;;  %v368_v26 = vpack.c.bf16 %v303_v19, %v302_v15 }
  0xb5   :  { %539 = vmatmul.bf16.vlgmr.msrb.gmra.mxu0 %v368_v26  ;;  %v357_v27 = vsel %vm98_vm0, %v355_v20, %v356_v24  ;;  %v358_v28 = vsel %vm98_vm0, %v356_v24, %v355_v20  ;;  %v363_v29 = vsel %vm105_vm1, %v361_v21, %v362_v25  ;;  %v364_v30 = vsel %vm105_vm1, %v362_v25, %v361_v21 }
  0xb6   :  { %v818_v31 = vpack.c.bf16 %v357_v27, %v358_v28  ;;  %v822_v32 = vpack.c.bf16 %v364_v30, %v363_v29 }
  0xb8   :  { %819 = vmatmul.msk.bf16.vlgmr.msra.gmra.mxu3 %vm1012_vm5, %v818_v31  ;;  %823 = vmatmul.msk.bf16.vlgmr.msrb.gmra.mxu1 %vm1016_vm6, %v822_v32 }
 0x132   :  { %v540_v34 = vpop.f32.mrf.mxu0 }
 0x135   :  { %v554_v37 = vpop.f32.mrf.mxu1 }
 0x13a   :  { %v542_v42 = vpop.f32.mrf.mxu0 }
 0x13b   :  { %v526_v35 = vpop.f32.mrf.mxu3 }
 0x13c   :  { %v527_v36 = vadd.f32 %v876_v33, %v526_v35 }
 0x13d   :  { %v556_v44 = vpop.f32.mrf.mxu1 }
 0x13e   :  { %v541_v38 = vadd.f32 %v540_v34, %v527_v36 }
 0x140   :  { %v555_v39 = vadd.f32 %v554_v37, %v541_v38 }
 0x142   :  { %v559_v18 = vadd.f32 %v555_v39, %v963_v22 }
 0x143   :  { %v528_v40 = vpop.f32.mrf.mxu3 }
 0x144   :  { %561 = vst [vmem:[%s1113_s3] sm:$0xff] %v559_v18  ;;  %v529_v41 = vadd.f32 %v876_v33, %v528_v40 }
 0x146   :  { %v543_v43 = vadd.f32 %v542_v42, %v529_v41 }
 0x148   :  { %v557_v45 = vadd.f32 %v556_v44, %v543_v43 }
 0x14a   :  { %v560_v46 = vadd.f32 %v557_v45, %v968_v23 }
 0x14c   :  { %562 = vst [vmem:[%s1113_s3 + $0x8] sm:$0xff] %v560_v46 }

</bundles_post_ra>
